<compile_context>
chip_gen: v7x
topology: tpu7x:2x2x1
jax: 0.10.0
libtpu: 0.0.40
codegen_flags: <defaults>
</compile_context>

<pallas_src>
import functools

import jax
import jax.numpy as jnp
from jax import lax
from jax.experimental import pallas as pl
from jax.experimental.pallas import tpu as pltpu

BN_EPS = 1e-5


def _res_block_kernel(x_ref,
                      w1_ref, a1_ref, s1_ref,
                      w2_ref, a2_ref, s2_ref,
                      w3_ref, a3_ref, s3_ref,
                      out_ref,
                      buf_ref,
                      *, K, p, L, Lp, W):
    """One lane-dense block of NB batch elements per grid step.

    Layout: activations are (C, W) with W a multiple of 128; the first NB*Lp
    lanes hold NB contiguous Lp = L + 2p segments whose first/last p lanes are
    zero halos (so conv shifts never need per-tap masking); trailing lanes are
    zero padding and never feed any real output lane.

    x_ref  : (Cin, W)        padded-lane input (zero halos/tail), Cin == 32
    w*_ref : (Cout, K*Cin)   tap-stacked conv weights, row index = k*Cin + c
    a*_ref : (Cout, 1)       folded BN scale  (gamma / sqrt(var + eps))
    s*_ref : (Cout, 1)       folded BN shift  (a * (bias - mean) + beta)
    out_ref: (32, W)         padded-lane output (halo/tail lanes undefined)
    buf_ref: (32, W + 2p)    VMEM staging buffer for shifted im2col reads
    """
    f32 = jnp.float32
    cin0 = x_ref.shape[0]

    # Zero only the 2p outer halo columns of the staging buffer (tiny).
    if p > 0:
        halo = jnp.zeros((buf_ref.shape[0], p), f32)
        buf_ref[:, 0:p] = halo
        buf_ref[:, p + W:p + W + p] = halo

    # valid-lane mask: True for real spatial positions, False for halo lanes.
    t = lax.broadcasted_iota(jnp.int32, (1, W), 1) % Lp
    valid = jnp.logical_and(t >= p, t < p + L)

    def conv_bn_relu(cin, w_ref, a_ref, s_ref):
        # buf_ref[0:cin, p:p+W] holds this layer's input (zero halos).
        # Build the (K*cin, W) im2col RHS from K statically shifted slices
        # and do ONE fused MXU matmul instead of K accumulating dots.
        cols = jnp.concatenate(
            [buf_ref[0:cin, k:k + W] for k in range(K)], axis=0)
        y = jnp.dot(w_ref[...], cols, preferred_element_type=f32)  # (Cout, W)
        y = y * a_ref[...] + s_ref[...]
        return jnp.maximum(y, 0.0)

    # ---- layer 1: 32 -> 32 (input halos are already zero) ----
    buf_ref[0:cin0, p:p + W] = x_ref[...]
    h1 = conv_bn_relu(cin0, w1_ref, a1_ref, s1_ref)          # (32, W)

    # ---- layer 2: 32 -> 16 (re-zero halo lanes while staging) ----
    buf_ref[:, p:p + W] = jnp.where(valid, h1, 0.0)
    h2 = conv_bn_relu(32, w2_ref, a2_ref, s2_ref)            # (16, W)

    # ---- layer 3: 16 -> 32 ----
    buf_ref[0:16, p:p + W] = jnp.where(valid, h2, 0.0)
    h3 = conv_bn_relu(16, w3_ref, a3_ref, s3_ref)            # (32, W)

    # identity residual: full-tile aligned add (halo/tail lanes stripped by caller)
    out_ref[...] = (h3 + x_ref[...]).astype(out_ref.dtype)


def res_basic_block(x, params, kernelsize):
    """x: (N, in_ch, L) float32. params: dict of per-layer tensors."""
    N, Cin, L = x.shape
    if Cin != 32:
        raise ValueError("identity residual requires in_ch == 32")
    K = kernelsize
    p = (K - 1) // 2
    Lp = L + 2 * p

    # Choose NB = batch elements per grid block: largest divisor of N whose
    # folded lane width fits a comfortable VMEM budget.  At demo sizes this is
    # all of N (one grid step).
    MAX_BLOCK_LANES = 4096
    NB = 1
    for d in range(N, 0, -1):
        if N % d == 0 and d * Lp <= MAX_BLOCK_LANES:
            NB = d
            break
    n_blocks = N // NB
    # Round the per-block lane width up to a multiple of 128 so every store is
    # an unmasked lane-dense vst and BlockSpecs satisfy the (8,128) rule.
    W_blk = ((NB * Lp + 127) // 128) * 128

    # Glue: zero-pad L, fold batch into the lane axis, zero-pad each block's
    # lane tail -> (Cin, n_blocks*W_blk).
    x_pad = jnp.pad(x, ((0, 0), (0, 0), (p, p)))              # (N, Cin, Lp)
    x2d = jnp.transpose(x_pad, (1, 0, 2)).reshape(Cin, n_blocks, NB * Lp)
    x2d = jnp.pad(x2d, ((0, 0), (0, 0), (0, W_blk - NB * Lp)))
    x2d = x2d.reshape(Cin, n_blocks * W_blk).astype(jnp.float32)

    def fold_bn(w, b, gamma, beta, rmean, rvar):
        cout, cin, k = w.shape
        # (Cout, Cin, K) -> (Cout, K*Cin); row index k*Cin + c matches the
        # in-kernel im2col stacking order.
        w_t = jnp.transpose(w, (0, 2, 1)).reshape(cout, k * cin)
        a = gamma / jnp.sqrt(rvar + BN_EPS)
        s = a * (b - rmean) + beta
        return (w_t.astype(jnp.float32),
                a[:, None].astype(jnp.float32),
                s[:, None].astype(jnp.float32))

    w1, a1, s1 = fold_bn(*params["layer1"])
    w2, a2, s2 = fold_bn(*params["layer2"])
    w3, a3, s3 = fold_bn(*params["layer3"])

    kernel = functools.partial(_res_block_kernel,
                               K=K, p=p, L=L, Lp=Lp, W=W_blk)
    full = lambda arr: pl.BlockSpec(arr.shape, lambda i: (0,) * arr.ndim)

    out2d = pl.pallas_call(
        kernel,
        out_shape=jax.ShapeDtypeStruct((32, n_blocks * W_blk), jnp.float32),
        grid_spec=pltpu.PrefetchScalarGridSpec(
            num_scalar_prefetch=0,
            grid=(n_blocks,),
            in_specs=[
                pl.BlockSpec((Cin, W_blk), lambda i: (0, i)),
                full(w1), full(a1), full(s1),
                full(w2), full(a2), full(s2),
                full(w3), full(a3), full(s3),
            ],
            out_specs=pl.BlockSpec((32, W_blk), lambda i: (0, i)),
            scratch_shapes=[pltpu.VMEM((32, W_blk + 2 * p), jnp.float32)],
        ),
        compiler_params=pltpu.CompilerParams(
            dimension_semantics=("parallel",)),
    )(x2d, w1, a1, s1, w2, a2, s2, w3, a3, s3)

    # (32, n_blocks*W_blk) -> (N, 32, L): drop tail lanes, strip halos, NCL.
    out = out2d.reshape(32, n_blocks, W_blk)[:, :, :NB * Lp]
    out = out.reshape(32, N, Lp)[:, :, p:p + L]
    return jnp.transpose(out, (1, 0, 2))


def _ref_forward(x, params, kernelsize):
    """Pure-JAX reference (eval-mode BatchNorm)."""
    p = (kernelsize - 1) // 2
    h = x
    for name in ("layer1", "layer2", "layer3"):
        w, b, g, be, rm, rv = params[name]
        h = lax.conv_general_dilated(
            h, w, window_strides=(1,), padding=[(p, p)],
            dimension_numbers=("NCH", "OIH", "NCH"))
        h = h + b[None, :, None]
        h = g[None, :, None] * (h - rm[None, :, None]) / jnp.sqrt(
            rv[None, :, None] + BN_EPS) + be[None, :, None]
        h = jnp.maximum(h, 0.0)
    return h + x


def _init_params(key, in_ch, kernelsize):
    """Deterministic synthetic parameters (conv w/b + BN gamma/beta/mean/var)."""
    def layer(k, cin, cout):
        ks = jax.random.split(k, 6)
        w = jax.random.normal(ks[0], (cout, cin, kernelsize), jnp.float32) * 0.1
        b = jax.random.normal(ks[1], (cout,), jnp.float32) * 0.05
        gamma = 1.0 + 0.1 * jax.random.normal(ks[2], (cout,), jnp.float32)
        beta = 0.05 * jax.random.normal(ks[3], (cout,), jnp.float32)
        rmean = 0.05 * jax.random.normal(ks[4], (cout,), jnp.float32)
        rvar = 1.0 + 0.1 * jax.random.uniform(ks[5], (cout,), jnp.float32)
        return (w, b, gamma, beta, rmean, rvar)

    k1, k2, k3 = jax.random.split(key, 3)
    return {
        "layer1": layer(k1, in_ch, 32),
        "layer2": layer(k2, 32, 16),
        "layer3": layer(k3, 16, 32),
    }


if __name__ == "__main__":
    # Identity residual forces in_ch == 32 (block output has 32 channels).
    N, IN_CH, L, KSIZE = 2, 32, 16, 3

    key = jax.random.PRNGKey(0)
    kx, kp = jax.random.split(key)
    x = jax.random.normal(kx, (N, IN_CH, L), jnp.float32)
    params = _init_params(kp, IN_CH, KSIZE)

    out = res_basic_block(x, params, KSIZE)
    out = jax.block_until_ready(out)

    ref = _ref_forward(x, params, KSIZE)
    assert out.shape == (N, 32, L)
    assert jnp.allclose(out, ref, atol=1e-4, rtol=1e-4), "mismatch vs reference"
    print("KERNEL_OK")
</pallas_src>

<mosaic_0001>
module attributes {stable_mosaic.version = 11 : i64} {
  func.func @_res_block_kernel(%arg0: i32, %arg1: memref<32x128xf32, #tpu.memory_space<vmem>>, %arg2: memref<32x96xf32, #tpu.memory_space<vmem>>, %arg3: memref<32x1xf32, #tpu.memory_space<vmem>>, %arg4: memref<32x1xf32, #tpu.memory_space<vmem>>, %arg5: memref<16x96xf32, #tpu.memory_space<vmem>>, %arg6: memref<16x1xf32, #tpu.memory_space<vmem>>, %arg7: memref<16x1xf32, #tpu.memory_space<vmem>>, %arg8: memref<32x48xf32, #tpu.memory_space<vmem>>, %arg9: memref<32x1xf32, #tpu.memory_space<vmem>>, %arg10: memref<32x1xf32, #tpu.memory_space<vmem>>, %arg11: memref<32x128xf32, #tpu.memory_space<vmem>>, %arg12: memref<32x130xf32, #tpu.memory_space<vmem>>) attributes {dimension_semantics = [#tpu.dimension_semantics<parallel>], iteration_bounds = array<i64: 1>, scalar_prefetch = 0 : i64, scratch_operands = 1 : i64, tpu.core_type = #tpu.core_type<tc>, window_params = [{transform_indices = @transform_0, window_bounds = array<i64: 32, 128>}, {pipeline_mode = #tpu.pipeline_mode<synchronous>, transform_indices = @transform_1, window_bounds = array<i64: 32, 96>}, {pipeline_mode = #tpu.pipeline_mode<synchronous>, transform_indices = @transform_2, window_bounds = array<i64: 32, 1>}, {pipeline_mode = #tpu.pipeline_mode<synchronous>, transform_indices = @transform_3, window_bounds = array<i64: 32, 1>}, {pipeline_mode = #tpu.pipeline_mode<synchronous>, transform_indices = @transform_4, window_bounds = array<i64: 16, 96>}, {pipeline_mode = #tpu.pipeline_mode<synchronous>, transform_indices = @transform_5, window_bounds = array<i64: 16, 1>}, {pipeline_mode = #tpu.pipeline_mode<synchronous>, transform_indices = @transform_6, window_bounds = array<i64: 16, 1>}, {pipeline_mode = #tpu.pipeline_mode<synchronous>, transform_indices = @transform_7, window_bounds = array<i64: 32, 48>}, {pipeline_mode = #tpu.pipeline_mode<synchronous>, transform_indices = @transform_8, window_bounds = array<i64: 32, 1>}, {pipeline_mode = #tpu.pipeline_mode<synchronous>, transform_indices = @transform_9, window_bounds = array<i64: 32, 1>}, {transform_indices = @transform_10, window_bounds = array<i64: 32, 128>}]} {
    %cst = arith.constant 0.000000e+00 : f32
    %0 = vector.broadcast %cst : f32 to vector<32x1xf32>
    %c0 = arith.constant 0 : index
    %c0_0 = arith.constant 0 : index
    %1 = vector.load %arg12[%c0, %c0_0] : memref<32x130xf32, #tpu.memory_space<vmem>>, vector<32x1xf32>
    tpu.vector_store %arg12[%c0, %c0_0], %0 {strides = array<i32>} : memref<32x130xf32, #tpu.memory_space<vmem>>, vector<32x1xf32>,
    %c0_1 = arith.constant 0 : index
    %c129 = arith.constant 129 : index
    %2 = vector.load %arg12[%c0_1, %c129] : memref<32x130xf32, #tpu.memory_space<vmem>>, vector<32x1xf32>
    tpu.vector_store %arg12[%c0_1, %c129], %0 {strides = array<i32>} : memref<32x130xf32, #tpu.memory_space<vmem>>, vector<32x1xf32>,
    %3 = tpu.iota {dimensions = array<i32: 1>} : vector<1x128xi32>
    %c18_i32 = arith.constant 18 : i32
    %c0_i32 = arith.constant 0 : i32
    %4 = arith.cmpi eq, %c18_i32, %c0_i32 : i32
    %c1_i32 = arith.constant 1 : i32
    %5 = arith.select %4, %c1_i32, %c18_i32 : i32
    %6 = vector.broadcast %5 : i32 to vector<1x128xi32>
    %7 = arith.remsi %3, %6 : vector<1x128xi32>
    %c0_i32_2 = arith.constant 0 : i32
    %8 = vector.broadcast %c0_i32_2 : i32 to vector<1x128xi32>
    %9 = arith.cmpi ne, %7, %8 : vector<1x128xi32>
    %c0_i32_3 = arith.constant 0 : i32
    %10 = vector.broadcast %c0_i32_3 : i32 to vector<1x128xi32>
    %11 = arith.cmpi slt, %7, %10 : vector<1x128xi32>
    %c0_i32_4 = arith.constant 0 : i32
    %12 = arith.cmpi slt, %5, %c0_i32_4 : i32
    %13 = vector.broadcast %12 : i1 to vector<1x128xi1>
    %14 = vector.broadcast %13 : vector<1x128xi1> to vector<1x128xi1>
    %15 = arith.xori %11, %14 : vector<1x128xi1>
    %16 = arith.andi %15, %9 : vector<1x128xi1>
    %17 = vector.broadcast %5 : i32 to vector<1x128xi32>
    %18 = arith.addi %7, %17 : vector<1x128xi32>
    %19 = arith.select %16, %18, %7 : vector<1x128xi1>, vector<1x128xi32>
    %c1_i32_5 = arith.constant 1 : i32
    %20 = vector.broadcast %c1_i32_5 : i32 to vector<1x128xi32>
    %21 = arith.cmpi sge, %19, %20 : vector<1x128xi32>
    %c17_i32 = arith.constant 17 : i32
    %22 = vector.broadcast %c17_i32 : i32 to vector<1x128xi32>
    %23 = arith.cmpi slt, %19, %22 : vector<1x128xi32>
    %24 = arith.andi %21, %23 : vector<1x128xi1>
    %c0_6 = arith.constant 0 : index
    %c0_7 = arith.constant 0 : index
    %25 = vector.load %arg1[%c0_6, %c0_7] : memref<32x128xf32, #tpu.memory_space<vmem>>, vector<32x128xf32>
    %c0_8 = arith.constant 0 : index
    %c1 = arith.constant 1 : index
    %26 = vector.load %arg12[%c0_8, %c1] : memref<32x130xf32, #tpu.memory_space<vmem>>, vector<32x128xf32>
    tpu.vector_store %arg12[%c0_8, %c1], %25 {strides = array<i32>} : memref<32x130xf32, #tpu.memory_space<vmem>>, vector<32x128xf32>,
    %c0_9 = arith.constant 0 : index
    %c0_10 = arith.constant 0 : index
    %27 = vector.load %arg12[%c0_9, %c0_10] : memref<32x130xf32, #tpu.memory_space<vmem>>, vector<32x128xf32>
    %c0_11 = arith.constant 0 : index
    %c1_12 = arith.constant 1 : index
    %28 = vector.load %arg12[%c0_11, %c1_12] : memref<32x130xf32, #tpu.memory_space<vmem>>, vector<32x128xf32>
    %c0_13 = arith.constant 0 : index
    %c2 = arith.constant 2 : index
    %29 = vector.load %arg12[%c0_13, %c2] : memref<32x130xf32, #tpu.memory_space<vmem>>, vector<32x128xf32>
    %30 = tpu.concatenate %27, %28, %29 in 0 : vector<32x128xf32>, vector<32x128xf32>, vector<32x128xf32> -> vector<96x128xf32>
    %c0_14 = arith.constant 0 : index
    %c0_15 = arith.constant 0 : index
    %31 = vector.load %arg2[%c0_14, %c0_15] : memref<32x96xf32, #tpu.memory_space<vmem>>, vector<32x96xf32>
    %cst_16 = arith.constant dense<0.000000e+00> : vector<32x128xf32>
    %32 = tpu.matmul %31, %30, %cst_16 {dimension_numbers = #tpu.dot_dimension_numbers<[1], [0], [0], [1], [0, 0, 1, 1], [], []>} : vector<32x96xf32>, vector<96x128xf32>, vector<32x128xf32> -> vector<32x128xf32>
    %c0_17 = arith.constant 0 : index
    %c0_18 = arith.constant 0 : index
    %33 = vector.load %arg3[%c0_17, %c0_18] : memref<32x1xf32, #tpu.memory_space<vmem>>, vector<32x1xf32>
    %34 = vector.broadcast %33 : vector<32x1xf32> to vector<32x128xf32>
    %35 = arith.mulf %32, %34 : vector<32x128xf32>
    %c0_19 = arith.constant 0 : index
    %c0_20 = arith.constant 0 : index
    %36 = vector.load %arg4[%c0_19, %c0_20] : memref<32x1xf32, #tpu.memory_space<vmem>>, vector<32x1xf32>
    %37 = vector.broadcast %36 : vector<32x1xf32> to vector<32x128xf32>
    %38 = arith.addf %35, %37 : vector<32x128xf32>
    %cst_21 = arith.constant 0.000000e+00 : f32
    %39 = vector.broadcast %cst_21 : f32 to vector<32x128xf32>
    %40 = arith.maximumf %38, %39 : vector<32x128xf32>
    %cst_22 = arith.constant 0.000000e+00 : f32
    %41 = vector.shape_cast %24 : vector<1x128xi1> to vector<1x128xi1>
    %42 = vector.broadcast %41 : vector<1x128xi1> to vector<32x128xi1>
    %43 = vector.broadcast %cst_22 : f32 to vector<32x128xf32>
    %44 = arith.select %42, %40, %43 : vector<32x128xi1>, vector<32x128xf32>
    %c0_23 = arith.constant 0 : index
    %c1_24 = arith.constant 1 : index
    %45 = vector.load %arg12[%c0_23, %c1_24] : memref<32x130xf32, #tpu.memory_space<vmem>>, vector<32x128xf32>
    tpu.vector_store %arg12[%c0_23, %c1_24], %44 {strides = array<i32>} : memref<32x130xf32, #tpu.memory_space<vmem>>, vector<32x128xf32>,
    %c0_25 = arith.constant 0 : index
    %c0_26 = arith.constant 0 : index
    %46 = vector.load %arg12[%c0_25, %c0_26] : memref<32x130xf32, #tpu.memory_space<vmem>>, vector<32x128xf32>
    %c0_27 = arith.constant 0 : index
    %c1_28 = arith.constant 1 : index
    %47 = vector.load %arg12[%c0_27, %c1_28] : memref<32x130xf32, #tpu.memory_space<vmem>>, vector<32x128xf32>
    %c0_29 = arith.constant 0 : index
    %c2_30 = arith.constant 2 : index
    %48 = vector.load %arg12[%c0_29, %c2_30] : memref<32x130xf32, #tpu.memory_space<vmem>>, vector<32x128xf32>
    %49 = tpu.concatenate %46, %47, %48 in 0 : vector<32x128xf32>, vector<32x128xf32>, vector<32x128xf32> -> vector<96x128xf32>
    %c0_31 = arith.constant 0 : index
    %c0_32 = arith.constant 0 : index
    %50 = vector.load %arg5[%c0_31, %c0_32] : memref<16x96xf32, #tpu.memory_space<vmem>>, vector<16x96xf32>
    %cst_33 = arith.constant dense<0.000000e+00> : vector<16x128xf32>
    %51 = tpu.matmul %50, %49, %cst_33 {dimension_numbers = #tpu.dot_dimension_numbers<[1], [0], [0], [1], [0, 0, 1, 1], [], []>} : vector<16x96xf32>, vector<96x128xf32>, vector<16x128xf32> -> vector<16x128xf32>
    %c0_34 = arith.constant 0 : index
    %c0_35 = arith.constant 0 : index
    %52 = vector.load %arg6[%c0_34, %c0_35] : memref<16x1xf32, #tpu.memory_space<vmem>>, vector<16x1xf32>
    %53 = vector.broadcast %52 : vector<16x1xf32> to vector<16x128xf32>
    %54 = arith.mulf %51, %53 : vector<16x128xf32>
    %c0_36 = arith.constant 0 : index
    %c0_37 = arith.constant 0 : index
    %55 = vector.load %arg7[%c0_36, %c0_37] : memref<16x1xf32, #tpu.memory_space<vmem>>, vector<16x1xf32>
    %56 = vector.broadcast %55 : vector<16x1xf32> to vector<16x128xf32>
    %57 = arith.addf %54, %56 : vector<16x128xf32>
    %cst_38 = arith.constant 0.000000e+00 : f32
    %58 = vector.broadcast %cst_38 : f32 to vector<16x128xf32>
    %59 = arith.maximumf %57, %58 : vector<16x128xf32>
    %cst_39 = arith.constant 0.000000e+00 : f32
    %60 = vector.shape_cast %24 : vector<1x128xi1> to vector<1x128xi1>
    %61 = vector.broadcast %60 : vector<1x128xi1> to vector<16x128xi1>
    %62 = vector.broadcast %cst_39 : f32 to vector<16x128xf32>
    %63 = arith.select %61, %59, %62 : vector<16x128xi1>, vector<16x128xf32>
    %c0_40 = arith.constant 0 : index
    %c1_41 = arith.constant 1 : index
    %64 = vector.load %arg12[%c0_40, %c1_41] : memref<32x130xf32, #tpu.memory_space<vmem>>, vector<16x128xf32>
    tpu.vector_store %arg12[%c0_40, %c1_41], %63 {strides = array<i32>} : memref<32x130xf32, #tpu.memory_space<vmem>>, vector<16x128xf32>,
    %c0_42 = arith.constant 0 : index
    %c0_43 = arith.constant 0 : index
    %65 = vector.load %arg12[%c0_42, %c0_43] : memref<32x130xf32, #tpu.memory_space<vmem>>, vector<16x128xf32>
    %c0_44 = arith.constant 0 : index
    %c1_45 = arith.constant 1 : index
    %66 = vector.load %arg12[%c0_44, %c1_45] : memref<32x130xf32, #tpu.memory_space<vmem>>, vector<16x128xf32>
    %c0_46 = arith.constant 0 : index
    %c2_47 = arith.constant 2 : index
    %67 = vector.load %arg12[%c0_46, %c2_47] : memref<32x130xf32, #tpu.memory_space<vmem>>, vector<16x128xf32>
    %68 = tpu.concatenate %65, %66, %67 in 0 : vector<16x128xf32>, vector<16x128xf32>, vector<16x128xf32> -> vector<48x128xf32>
    %c0_48 = arith.constant 0 : index
    %c0_49 = arith.constant 0 : index
    %69 = vector.load %arg8[%c0_48, %c0_49] : memref<32x48xf32, #tpu.memory_space<vmem>>, vector<32x48xf32>
    %cst_50 = arith.constant dense<0.000000e+00> : vector<32x128xf32>
    %70 = tpu.matmul %69, %68, %cst_50 {dimension_numbers = #tpu.dot_dimension_numbers<[1], [0], [0], [1], [0, 0, 1, 1], [], []>} : vector<32x48xf32>, vector<48x128xf32>, vector<32x128xf32> -> vector<32x128xf32>
    %c0_51 = arith.constant 0 : index
    %c0_52 = arith.constant 0 : index
    %71 = vector.load %arg9[%c0_51, %c0_52] : memref<32x1xf32, #tpu.memory_space<vmem>>, vector<32x1xf32>
    %72 = vector.broadcast %71 : vector<32x1xf32> to vector<32x128xf32>
    %73 = arith.mulf %70, %72 : vector<32x128xf32>
    %c0_53 = arith.constant 0 : index
    %c0_54 = arith.constant 0 : index
    %74 = vector.load %arg10[%c0_53, %c0_54] : memref<32x1xf32, #tpu.memory_space<vmem>>, vector<32x1xf32>
    %75 = vector.broadcast %74 : vector<32x1xf32> to vector<32x128xf32>
    %76 = arith.addf %73, %75 : vector<32x128xf32>
    %cst_55 = arith.constant 0.000000e+00 : f32
    %77 = vector.broadcast %cst_55 : f32 to vector<32x128xf32>
    %78 = arith.maximumf %76, %77 : vector<32x128xf32>
    %c0_56 = arith.constant 0 : index
    %c0_57 = arith.constant 0 : index
    %79 = vector.load %arg1[%c0_56, %c0_57] : memref<32x128xf32, #tpu.memory_space<vmem>>, vector<32x128xf32>
    %80 = arith.addf %78, %79 : vector<32x128xf32>
    %c0_58 = arith.constant 0 : index
    %c0_59 = arith.constant 0 : index
    %81 = vector.load %arg11[%c0_58, %c0_59] : memref<32x128xf32, #tpu.memory_space<vmem>>, vector<32x128xf32>
    tpu.vector_store %arg11[%c0_58, %c0_59], %80 {strides = array<i32>} : memref<32x128xf32, #tpu.memory_space<vmem>>, vector<32x128xf32>,
    return
  }
  func.func @transform_0(%arg0: i32) -> (i32, i32) {
    %c0_i32 = arith.constant 0 : i32
    %c0_i32_0 = arith.constant 0 : i32
    return %c0_i32, %arg0 : i32, i32
  }
  func.func @transform_1(%arg0: i32) -> (i32, i32) {
    %c0_i32 = arith.constant 0 : i32
    %c0_i32_0 = arith.constant 0 : i32
    %c0_i32_1 = arith.constant 0 : i32
    return %c0_i32, %c0_i32_0 : i32, i32
  }
  func.func @transform_2(%arg0: i32) -> (i32, i32) {
    %c0_i32 = arith.constant 0 : i32
    %c0_i32_0 = arith.constant 0 : i32
    %c0_i32_1 = arith.constant 0 : i32
    return %c0_i32, %c0_i32_0 : i32, i32
  }
  func.func @transform_3(%arg0: i32) -> (i32, i32) {
    %c0_i32 = arith.constant 0 : i32
    %c0_i32_0 = arith.constant 0 : i32
    %c0_i32_1 = arith.constant 0 : i32
    return %c0_i32, %c0_i32_0 : i32, i32
  }
  func.func @transform_4(%arg0: i32) -> (i32, i32) {
    %c0_i32 = arith.constant 0 : i32
    %c0_i32_0 = arith.constant 0 : i32
    %c0_i32_1 = arith.constant 0 : i32
    return %c0_i32, %c0_i32_0 : i32, i32
  }
  func.func @transform_5(%arg0: i32) -> (i32, i32) {
    %c0_i32 = arith.constant 0 : i32
    %c0_i32_0 = arith.constant 0 : i32
    %c0_i32_1 = arith.constant 0 : i32
    return %c0_i32, %c0_i32_0 : i32, i32
  }
  func.func @transform_6(%arg0: i32) -> (i32, i32) {
    %c0_i32 = arith.constant 0 : i32
    %c0_i32_0 = arith.constant 0 : i32
    %c0_i32_1 = arith.constant 0 : i32
    return %c0_i32, %c0_i32_0 : i32, i32
  }
  func.func @transform_7(%arg0: i32) -> (i32, i32) {
    %c0_i32 = arith.constant 0 : i32
    %c0_i32_0 = arith.constant 0 : i32
    %c0_i32_1 = arith.constant 0 : i32
    return %c0_i32, %c0_i32_0 : i32, i32
  }
  func.func @transform_8(%arg0: i32) -> (i32, i32) {
    %c0_i32 = arith.constant 0 : i32
    %c0_i32_0 = arith.constant 0 : i32
    %c0_i32_1 = arith.constant 0 : i32
    return %c0_i32, %c0_i32_0 : i32, i32
  }
  func.func @transform_9(%arg0: i32) -> (i32, i32) {
    %c0_i32 = arith.constant 0 : i32
    %c0_i32_0 = arith.constant 0 : i32
    %c0_i32_1 = arith.constant 0 : i32
    return %c0_i32, %c0_i32_0 : i32, i32
  }
  func.func @transform_10(%arg0: i32) -> (i32, i32) {
    %c0_i32 = arith.constant 0 : i32
    %c0_i32_0 = arith.constant 0 : i32
    return %c0_i32, %arg0 : i32, i32
  }
}

</mosaic_0001>

<bundles_post_ra>
// kernel: tpu_custom_call.1
= control target key start
LH: loop header
LB: loop body
LE: loop exit
PB: predicated region body
PF: predicated region fallthrough
CT: control target
= control target key end

     0   :  { %vm36_vm0 = vcmask 7168   ;;  %s1094_s17 = smov 1   ;;  %vm41_vm1 = vcmask 15368   ;;  %s1391_s0 = inlined_call_operand.vmem [shape: f32[32,128], index: 0, kind: input, shape index: {}]   ;;  %s1392_s1 = inlined_call_operand.vmem [shape: f32[32,96], index: 1, kind: input, shape index: {}]   ;;  %s1393_s2 = inlined_call_operand.vmem [shape: f32[32,1], index: 2, kind: input, shape index: {}]   ;;  %s1394_s3 = inlined_call_operand.vmem [shape: f32[32,1], index: 3, kind: input, shape index: {}]   ;;  %s1395_s4 = inlined_call_operand.vmem [shape: f32[16,96], index: 4, kind: input, shape index: {}]   ;;  %s1396_s5 = inlined_call_operand.vmem [shape: f32[16,1], index: 5, kind: input, shape index: {}]   ;;  %s1397_s6 = inlined_call_operand.vmem [shape: f32[16,1], index: 6, kind: input, shape index: {}]   ;;  %s1398_s7 = inlined_call_operand.vmem [shape: f32[32,48], index: 7, kind: input, shape index: {}]   ;;  %s1399_s8 = inlined_call_operand.vmem [shape: f32[32,1], index: 8, kind: input, shape index: {}]   ;;  %s1400_s9 = inlined_call_operand.vmem [shape: f32[32,1], index: 9, kind: input, shape index: {}]   ;;  %s1401_s10 = inlined_call_operand.hbm [shape: f32[32,128], index: 10, kind: output, shape index: {}]  }
   0x1   :  { %v1160_v0 = vld [vmem:[%s1391_s0 + $0x10] sm:$0xff]  ;;  %v1165_v1 = vld [vmem:[%s1391_s0] sm:$0xff] }
   0x2   :  { %79 = vrot.lane.b32.xlu1 %v1160_v0, %s1094_s17  ;;  %75 = vrot.lane.b32.xlu0 %v1165_v1, %s1094_s17 }
   0x3   :  { %15 = vsyncpa [#allocation4], 0  ;;  %v1174_v2 = vld [vmem:[%s1391_s0 + $0x18] sm:$0xff]  ;;  %v1179_v3 = vld [vmem:[%s1391_s0 + $0x8] sm:$0xff]  ;;  %v1095_v4 = vmov 0.0   ;;  %vm87_vm2 = vcmask 1047560  }
   0x4   :  { %39 = vst.msk [vmem:[#allocation2 + $0x20] sm:$0xff] %vm36_vm0, %v1095_v4  ;;  %37 = vst.msk [vmem:[#allocation2] sm:$0xff] %vm36_vm0, %v1095_v4  ;;  %s1096_s0 = smov 127   ;;  %s1097_s22 = smov 126   ;;  %v162_v23 = vld [vmem:[%s1392_s1] sm:$0xff]  ;;  %vm166_vm3 = vcmask 785408  }
   0x5   :  { %44 = vst.msk [vmem:[#allocation2 + $0x28] sm:$0xff] %vm41_vm1, %v1095_v4  ;;  %42 = vst.msk [vmem:[#allocation2 + $0x8] sm:$0xff] %vm41_vm1, %v1095_v4  ;;  %841 = vmatprep.mubr.msk.f32.mxu0 %vm166_vm3, %v162_v23  ;;  %v264_v24 = vld [vmem:[%s1393_s2] sm:$0xff]  ;;  %v1098_v25 = vmov 0   ;;  %v265_v26 = vld [vmem:[%s1393_s2 + $0x8] sm:$0xff]  ;;  %vm128_vm4 = vcmask 1039360  }
   0x6   :  { %38 = vst.msk [vmem:[#allocation2 + $0x10] sm:$0xff] %vm36_vm0, %v1095_v4  ;;  %40 = vst.msk [vmem:[#allocation2 + $0x30] sm:$0xff] %vm36_vm0, %v1095_v4  ;;  %81 = vrot.lane.b32.xlu1 %v1174_v2, %s1094_s17  ;;  %77 = vrot.lane.b32.xlu0 %v1179_v3, %s1094_s17  ;;  %v293_v27 = vld [vmem:[%s1394_s3 + $0x8] sm:$0xff]  ;;  %v292_v28 = vld [vmem:[%s1394_s3] sm:$0xff]  ;;  %vm153_vm5 = vcmask 1031168   ;;  %vm581_vm12 = vcmask 392192  }
   0x7   :  { %43 = vst.msk [vmem:[#allocation2 + $0x18] sm:$0xff] %vm41_vm1, %v1095_v4  ;;  %45 = vst.msk [vmem:[#allocation2 + $0x38] sm:$0xff] %vm41_vm1, %v1095_v4  ;;  %1009 = vset.pattern.permute.xlu1 %v1098_v25  ;;  %1008 = vset.pattern.permute.xlu0 %v1098_v25  ;;  %v267_v29 = vld [vmem:[%s1393_s2 + $0x18] sm:$0xff]  ;;  %v266_v30 = vld [vmem:[%s1393_s2 + $0x10] sm:$0xff] }
   0x8   :  { %v295_v31 = vld [vmem:[%s1394_s3 + $0x18] sm:$0xff]  ;;  %v294_v32 = vld [vmem:[%s1394_s3 + $0x10] sm:$0xff] }
  0x74   :  { %v80_v5 = vpop.permute.xlu1 %79  ;;  %v76_v6 = vpop.permute.xlu0 %75 }
  0x75   :  { %92 = vst.msk [vmem:[#allocation2 + $0x20] sm:$0xff] %vm87_vm2, %v80_v5  ;;  %88 = vst.msk [vmem:[#allocation2] sm:$0xff] %vm87_vm2, %v76_v6 }
  0x76   :  { %93 = vst.msk [vmem:[#allocation2 + $0x28] sm:$0xff] %vm36_vm0, %v80_v5  ;;  %89 = vst.msk [vmem:[#allocation2 + $0x8] sm:$0xff] %vm36_vm0, %v76_v6 }
  0x78   :  { %v82_v7 = vpop.permute.xlu1 %81  ;;  %v78_v8 = vpop.permute.xlu0 %77 }
  0x79   :  { %94 = vst.msk [vmem:[#allocation2 + $0x30] sm:$0xff] %vm87_vm2, %v82_v7  ;;  %90 = vst.msk [vmem:[#allocation2 + $0x10] sm:$0xff] %vm87_vm2, %v78_v8 }
  0x7a   :  { %95 = vst.msk [vmem:[#allocation2 + $0x38] sm:$0xff] %vm36_vm0, %v82_v7  ;;  %91 = vst.msk [vmem:[#allocation2 + $0x18] sm:$0xff] %vm36_vm0, %v78_v8 }
  0x7c   :  { %v96_v9 = vld [vmem:[#allocation2] sm:$0xff] }
  0x7d   :  { %v100_v10 = vld [vmem:[#allocation2 + $0x8] sm:$0xff]  ;;  %v98_v11 = vld [vmem:[#allocation2 + $0x20] sm:$0xff] }
  0x7e   :  { %v968_v12 = vpack.i.bf16 %v100_v10, %v96_v9  ;;  %v102_v13 = vld [vmem:[#allocation2 + $0x28] sm:$0xff]  ;;  %v164_v10 = vld [vmem:[%s1392_s1 + $0x10] sm:$0xff] }
  0x7f   :  { %v978_v14 = vpack.i.bf16 %v102_v13, %v98_v11 }
  0x80   :  { %969 = vrot.lane.b32.xlu0 %v968_v12, %s1096_s0  ;;  %v97_v15 = vld [vmem:[#allocation2 + $0x10] sm:$0xff] }
  0x81   :  { %v101_v16 = vld [vmem:[#allocation2 + $0x18] sm:$0xff]  ;;  %v892_v18 = vpack.c.bf16 %v97_v15, %v96_v9  ;;  %v99_v19 = vld [vmem:[#allocation2 + $0x30] sm:$0xff]  ;;  %v163_v9 = vld [vmem:[%s1392_s1 + $0x8] sm:$0xff] }
  0x82   :  { %v973_v17 = vpack.i.bf16 %v101_v16, %v97_v15  ;;  %v103_v20 = vld [vmem:[#allocation2 + $0x38] sm:$0xff]  ;;  %v896_v22 = vpack.c.bf16 %v99_v19, %v98_v11 }
  0x83   :  { %v983_v21 = vpack.i.bf16 %v103_v20, %v99_v19  ;;  %893 = vmatprep.subr.bf16.mxu0 %v892_v18  ;;  %v165_v11 = vld [vmem:[%s1392_s1 + $0x18] sm:$0xff] }
  0x84   :  { %974 = vrot.lane.b32.xlu1 %v973_v17, %s1096_s0  ;;  %979 = vrot.lane.b32.xlu0 %v978_v14, %s1096_s0 }
  0x85   :  { %895 = vmatpush3.bf16.msra.mxu0 %v892_v18 }
  0x86   :  { %897 = vmatprep.subr.bf16.mxu0 %v896_v22 }
  0x88   :  { %984 = vrot.lane.b32.xlu1 %v983_v21, %s1096_s0  ;;  %989 = vrot.lane.b32.xlu0 %v968_v12, %s1097_s22  ;;  %v46_v12 = vlaneseq }
  0x89   :  { %899 = vmatpush3.bf16.msra.mxu0 %v896_v22 }
  0x8a   :  { %v47_v13 = vand.u32 127, %v46_v12  ;;  %v515_v12 = vld [vmem:[%s1397_s6] sm:$0xff] }
  0x8c   :  { %994 = vrot.lane.b32.xlu1 %v973_v17, %s1097_s22  ;;  %999 = vrot.lane.b32.xlu0 %v978_v14, %s1097_s22  ;;  %v1253_v14 = vmul.u32.u64.low 3817748708, %v47_v13  ;;  %v1254_v15 = vmul.u32.u64.high 3817748708, %v47_v13, %v1253_v14 }
  0x8e   :  { %v54_v16 = vshrl.u32 %v1254_v15, 4 }
  0x90   :  { %1004 = vrot.lane.b32.xlu1 %v983_v21, %s1097_s22  ;;  %270 = vperm.xlu0 %1008, %v264_v24   ;;  %v55_v17 = vmul.u32 18, %v54_v16 }
  0x92   :  { %v56_v19 = vsub.s32 %v47_v13, %v55_v17 }
  0x94   :  { %275 = vperm.xlu1 %1009, %v265_v26   ;;  %303 = vperm.xlu0 %1008, %v293_v27   ;;  %vm59_vm6 = vcmp.ne.s32.totalorder %v56_v19, 0  ;;  %vm60_vm7 = vcmp.lt.s32.totalorder %v56_v19, 0  ;;  %v62_v22 = vadd.s32 18, %v56_v19 }
  0x95   :  { %vm61_vm8 = vmand %vm60_vm7, %vm59_vm6 }
  0x96   :  { %v63_v24 = vsel %vm61_vm8, %v62_v22, %v56_v19 }
  0x97   :  { %vm64_vm9 = vcmp.ge.s32.totalorder %v63_v24, 1  ;;  %vm65_vm10 = vcmp.lt.s32.totalorder %v63_v24, 17 }
  0x98   :  { %298 = vperm.xlu1 %1009, %v292_v28   ;;  %285 = vperm.xlu0 %1008, %v267_v29   ;;  %vm1257_vm11 = vmand %vm64_vm9, %vm65_vm10 }
  0x9c   :  { %280 = vperm.xlu1 %1009, %v266_v30   ;;  %313 = vperm.xlu0 %1008, %v295_v31  }
  0xa0   :  { %308 = vperm.xlu1 %1009, %v294_v32  }
  0xf2   :  { %v970_v33 = vpop.permute.xlu0 %969 }
  0xf3   :  { %v972_v34 = vunpack.i.h.bf16 %v970_v33  ;;  %v971_v35 = vunpack.i.l.bf16 %v970_v33 }
  0xf5   :  { %v129_v42 = vsel %vm128_vm4, %v971_v35, %v972_v34  ;;  %v577_v34 = vld [vmem:[%s1398_s7] sm:$0xff] }
  0xf6   :  { %v975_v36 = vpop.permute.xlu1 %974  ;;  %v980_v37 = vpop.permute.xlu0 %979 }
  0xf7   :  { %v977_v38 = vunpack.i.h.bf16 %v975_v36  ;;  %v976_v39 = vunpack.i.l.bf16 %v975_v36  ;;  %v982_v40 = vunpack.i.h.bf16 %v980_v37  ;;  %v981_v41 = vunpack.i.l.bf16 %v980_v37 }
  0xf9   :  { %v130_v43 = vsel %vm128_vm4, %v976_v39, %v977_v38  ;;  %v131_v51 = vsel %vm128_vm4, %v981_v41, %v982_v40 }
  0xfa   :  { %v985_v44 = vpop.permute.xlu1 %984  ;;  %v990_v45 = vpop.permute.xlu0 %989  ;;  %v900_v46 = vpack.c.bf16 %v130_v43, %v129_v42 }
  0xfb   :  { %v987_v47 = vunpack.i.h.bf16 %v985_v44  ;;  %v986_v48 = vunpack.i.l.bf16 %v985_v44  ;;  %v992_v49 = vunpack.i.h.bf16 %v990_v45  ;;  %v991_v50 = vunpack.i.l.bf16 %v990_v45 }
  0xfc   :  { %901 = vmatprep.subr.bf16.mxu0 %v900_v46 }
  0xfd   :  { %903 = vmatpush3.bf16.msra.mxu0 %v900_v46  ;;  %v132_v52 = vsel %vm128_vm4, %v986_v48, %v987_v47  ;;  %v154_v60 = vsel %vm153_vm5, %v991_v50, %v992_v49 }
  0xfe   :  { %v995_v53 = vpop.permute.xlu1 %994  ;;  %v1000_v54 = vpop.permute.xlu0 %999  ;;  %v904_v55 = vpack.c.bf16 %v132_v52, %v131_v51 }
  0xff   :  { %v997_v56 = vunpack.i.h.bf16 %v995_v53  ;;  %v996_v57 = vunpack.i.l.bf16 %v995_v53  ;;  %v1002_v58 = vunpack.i.h.bf16 %v1000_v54  ;;  %v1001_v59 = vunpack.i.l.bf16 %v1000_v54 }
 0x100   :  { %905 = vmatprep.subr.bf16.mxu0 %v904_v55 }
 0x101   :  { %907 = vmatpush3.bf16.msra.mxu0 %v904_v55  ;;  %v155_v61 = vsel %vm153_vm5, %v996_v57, %v997_v56  ;;  %v156_v6 = vsel %vm153_vm5, %v1001_v59, %v1002_v58 }
 0x102   :  { %v1005_v62 = vpop.permute.xlu1 %1004  ;;  %v908_v63 = vpack.c.bf16 %v155_v61, %v154_v60 }
 0x103   :  { %v1007_v4 = vunpack.i.h.bf16 %v1005_v62  ;;  %v1006_v5 = vunpack.i.l.bf16 %v1005_v62 }
 0x104   :  { %909 = vmatprep.subr.bf16.mxu0 %v908_v63 }
 0x105   :  { %911 = vmatpush3.bf16.msra.mxu0 %v908_v63  ;;  %v157_v7 = vsel %vm153_vm5, %v1006_v5, %v1007_v4 }
 0x106   :  { %v912_v8 = vpack.c.bf16 %v157_v7, %v156_v6 }
 0x108   :  { %913 = vmatprep.subr.bf16.mxu0 %v912_v8 }
 0x109   :  { %915 = vmatpush3.bf16.msra.mxu0 %v912_v8  ;;  %v418_v8 = vld [vmem:[%s1395_s4] sm:$0xff] }
 0x10a   :  { %871 = vmatprep.mubr.msk.f32.mxu1 %vm166_vm3, %v418_v8 }
 0x10c   :  { %842 = vmatmul.mubr.msk.f32.vlgmr.msra.gmra.mrb[0].mxu0 %vm166_vm3, %v163_v9  ;;  %v502_v9 = vld [vmem:[%s1396_s5 + $0x8] sm:$0xff] }
 0x10d   :  { %844 = vmatprep.mubr.msk.f32.mxu0 %vm166_vm3, %v164_v10  ;;  %v501_v10 = vld [vmem:[%s1396_s5] sm:$0xff] }
 0x10f   :  { %v271_v18 = vpop.permute.xlu0 %270 }
 0x110   :  { %845 = vmatmul.mubr.msk.f32.gmra.mrb[2].mxu0 %vm166_vm3, %v165_v11  ;;  %v516_v11 = vld [vmem:[%s1397_s6 + $0x8] sm:$0xff] }
 0x111   :  { %886 = vmatprep.mubr.msk.f32.mxu0 %vm581_vm12, %v577_v34 }
 0x113   :  { %v276_v20 = vpop.permute.xlu1 %275  ;;  %v304_v21 = vpop.permute.xlu0 %303 }
 0x117   :  { %v299_v23 = vpop.permute.xlu1 %298  ;;  %v286_v25 = vpop.permute.xlu0 %285 }
 0x11b   :  { %v281_v27 = vpop.permute.xlu1 %280  ;;  %v314_v38 = vpop.permute.xlu0 %313 }
 0x11f   :  { %v309_v41 = vpop.permute.xlu1 %308 }
 0x1df   :  { %v843_v26 = vpop.f32.mrb[0].mxu0 }
 0x1e0   :  { %v289_v28 = vmul.f32 %v843_v26, %v276_v20  ;;  %v245_v29 = vpop.f32.mrb[1].mxu0 }
 0x1e1   :  { %v288_v30 = vmul.f32 %v271_v18, %v245_v29 }
 0x1e2   :  { %v317_v31 = vadd.f32 %v304_v21, %v289_v28 }
 0x1e3   :  { %v316_v32 = vadd.f32 %v299_v23, %v288_v30  ;;  %v846_v33 = vpop.f32.mrb[2].mxu0 }
 0x1e4   :  { %v321_v35 = vmax.f32 %v317_v31, 0.0  ;;  %v291_v36 = vmul.f32 %v846_v33, %v286_v25  ;;  %v255_v37 = vpop.f32.mrb[3].mxu0 }
 0x1e5   :  { %v320_v39 = vmax.f32 %v316_v32, 0.0  ;;  %v290_v40 = vmul.f32 %v281_v27, %v255_v37 }
 0x1e6   :  { %v319_v42 = vadd.f32 %v314_v38, %v291_v36  ;;  %v327_v43 = vsel %vm1257_vm11, %v321_v35, 0.0 }
 0x1e7   :  { %v318_v44 = vadd.f32 %v309_v41, %v290_v40  ;;  %336 = vrot.lane.b32.xlu0 %v327_v43, %s1094_s17  ;;  %v326_v45 = vsel %vm1257_vm11, %v320_v39, 0.0 }
 0x1e8   :  { %v323_v46 = vmax.f32 %v319_v42, 0.0  ;;  %334 = vrot.lane.b32.xlu1 %v326_v45, %s1094_s17 }
 0x1e9   :  { %v322_v47 = vmax.f32 %v318_v44, 0.0 }
 0x1ea   :  { %v329_v48 = vsel %vm1257_vm11, %v323_v46, 0.0 }
 0x1eb   :  { %340 = vrot.lane.b32.xlu0 %v329_v48, %s1094_s17  ;;  %v328_v49 = vsel %vm1257_vm11, %v322_v47, 0.0 }
 0x1ec   :  { %338 = vrot.lane.b32.xlu1 %v328_v49, %s1094_s17 }
 0x259   :  { %v337_v50 = vpop.permute.xlu0 %336 }
 0x25a   :  { %348 = vst.msk [vmem:[#allocation2 + $0x10] sm:$0xff] %vm87_vm2, %v337_v50  ;;  %v335_v51 = vpop.permute.xlu1 %334 }
 0x25b   :  { %349 = vst.msk [vmem:[#allocation2 + $0x18] sm:$0xff] %vm36_vm0, %v337_v50  ;;  %347 = vst.msk [vmem:[#allocation2 + $0x8] sm:$0xff] %vm36_vm0, %v335_v51  ;;  %v419_v50 = vld [vmem:[%s1395_s4 + $0x8] sm:$0xff] }
 0x25c   :  { %346 = vst.msk [vmem:[#allocation2] sm:$0xff] %vm87_vm2, %v335_v51 }
 0x25d   :  { %v341_v52 = vpop.permute.xlu0 %340 }
 0x25e   :  { %352 = vst.msk [vmem:[#allocation2 + $0x30] sm:$0xff] %vm87_vm2, %v341_v52  ;;  %v339_v53 = vpop.permute.xlu1 %338 }
 0x25f   :  { %353 = vst.msk [vmem:[#allocation2 + $0x38] sm:$0xff] %vm36_vm0, %v341_v52  ;;  %351 = vst.msk [vmem:[#allocation2 + $0x28] sm:$0xff] %vm36_vm0, %v339_v53 }
 0x260   :  { %350 = vst.msk [vmem:[#allocation2 + $0x20] sm:$0xff] %vm87_vm2, %v339_v53 }
 0x261   :  { %v355_v54 = vld [vmem:[#allocation2 + $0x10] sm:$0xff] }
 0x262   :  { %v359_v55 = vld [vmem:[#allocation2 + $0x18] sm:$0xff]  ;;  %v358_v58 = vld [vmem:[#allocation2 + $0x8] sm:$0xff] }
 0x263   :  { %v1010_v56 = vpack.i.bf16 %v359_v55, %v355_v54  ;;  %v354_v57 = vld [vmem:[#allocation2] sm:$0xff] }
 0x264   :  { %v916_v59 = vpack.c.bf16 %v355_v54, %v354_v57  ;;  %v1015_v60 = vpack.i.bf16 %v358_v58, %v354_v57 }
 0x265   :  { %1011 = vrot.lane.b32.xlu0 %v1010_v56, %s1096_s0  ;;  %v357_v61 = vld [vmem:[#allocation2 + $0x30] sm:$0xff] }
 0x266   :  { %917 = vmatprep.subr.bf16.mxu1 %v916_v59  ;;  %1016 = vrot.lane.b32.xlu1 %v1015_v60, %s1096_s0  ;;  %v361_v62 = vld [vmem:[#allocation2 + $0x38] sm:$0xff]  ;;  %v360_v5 = vld [vmem:[#allocation2 + $0x28] sm:$0xff] }
 0x267   :  { %919 = vmatpush3.bf16.msra.mxu1 %v916_v59  ;;  %v1020_v63 = vpack.i.bf16 %v361_v62, %v357_v61  ;;  %v356_v4 = vld [vmem:[#allocation2 + $0x20] sm:$0xff] }
 0x268   :  { %v1025_v6 = vpack.i.bf16 %v360_v5, %v356_v4  ;;  %v920_v7 = vpack.c.bf16 %v357_v61, %v356_v4 }
 0x269   :  { %1021 = vrot.lane.b32.xlu0 %v1020_v63, %s1096_s0 }
 0x26a   :  { %1026 = vrot.lane.b32.xlu1 %v1025_v6, %s1096_s0  ;;  %921 = vmatprep.subr.bf16.mxu1 %v920_v7 }
 0x26b   :  { %923 = vmatpush3.bf16.msra.mxu1 %v920_v7 }
 0x26d   :  { %1036 = vrot.lane.b32.xlu0 %v1010_v56, %s1097_s22 }
 0x26e   :  { %1031 = vrot.lane.b32.xlu1 %v1015_v60, %s1097_s22 }
 0x271   :  { %1046 = vrot.lane.b32.xlu0 %v1020_v63, %s1097_s22 }
 0x272   :  { %1041 = vrot.lane.b32.xlu1 %v1025_v6, %s1097_s22 }
 0x275   :  { %510 = vperm.xlu0 %1008, %v502_v9  }
 0x276   :  { %505 = vperm.xlu1 %1009, %v501_v10  }
 0x279   :  { %524 = vperm.xlu0 %1008, %v516_v11  }
 0x27a   :  { %519 = vperm.xlu1 %1009, %v515_v12  }
 0x2d7   :  { %v1012_v13 = vpop.permute.xlu0 %1011 }
 0x2d8   :  { %v1014_v14 = vunpack.i.h.bf16 %v1012_v13  ;;  %v1013_v15 = vunpack.i.l.bf16 %v1012_v13  ;;  %v1017_v16 = vpop.permute.xlu1 %1016 }
 0x2d9   :  { %v1019_v17 = vunpack.i.h.bf16 %v1017_v16  ;;  %v1018_v18 = vunpack.i.l.bf16 %v1017_v16  ;;  %v679_v16 = vld [vmem:[%s1399_s8] sm:$0xff] }
 0x2da   :  { %v387_v19 = vsel %vm128_vm4, %v1013_v15, %v1014_v14  ;;  %v579_v14 = vld [vmem:[%s1398_s7 + $0x10] sm:$0xff]  ;;  %v680_v15 = vld [vmem:[%s1399_s8 + $0x8] sm:$0xff] }
 0x2db   :  { %v1022_v20 = vpop.permute.xlu0 %1021  ;;  %v386_v21 = vsel %vm128_vm4, %v1018_v18, %v1019_v17  ;;  %v682_v17 = vld [vmem:[%s1399_s8 + $0x18] sm:$0xff]  ;;  %v681_v18 = vld [vmem:[%s1399_s8 + $0x10] sm:$0xff] }
 0x2dc   :  { %v1024_v22 = vunpack.i.h.bf16 %v1022_v20  ;;  %v1023_v23 = vunpack.i.l.bf16 %v1022_v20  ;;  %v1027_v24 = vpop.permute.xlu1 %1026  ;;  %v924_v25 = vpack.c.bf16 %v387_v19, %v386_v21  ;;  %v708_v19 = vld [vmem:[%s1400_s9 + $0x8] sm:$0xff]  ;;  %v707_v20 = vld [vmem:[%s1400_s9] sm:$0xff]  ;;  %v710_v21 = vld [vmem:[%s1400_s9 + $0x18] sm:$0xff] }
 0x2dd   :  { %v1029_v26 = vunpack.i.h.bf16 %v1027_v24  ;;  %v1028_v27 = vunpack.i.l.bf16 %v1027_v24 }
 0x2de   :  { %925 = vmatprep.subr.bf16.mxu1 %v924_v25  ;;  %v389_v28 = vsel %vm128_vm4, %v1023_v23, %v1024_v22  ;;  %v709_v22 = vld [vmem:[%s1400_s9 + $0x10] sm:$0xff] }
 0x2df   :  { %v1037_v29 = vpop.permute.xlu0 %1036  ;;  %927 = vmatpush3.bf16.msra.mxu1 %v924_v25  ;;  %v388_v30 = vsel %vm128_vm4, %v1028_v27, %v1029_v26 }
 0x2e0   :  { %v1039_v31 = vunpack.i.h.bf16 %v1037_v29  ;;  %v1038_v32 = vunpack.i.l.bf16 %v1037_v29  ;;  %v1032_v33 = vpop.permute.xlu1 %1031  ;;  %v928_v35 = vpack.c.bf16 %v389_v28, %v388_v30 }
 0x2e1   :  { %v1034_v36 = vunpack.i.h.bf16 %v1032_v33  ;;  %v1033_v37 = vunpack.i.l.bf16 %v1032_v33 }
 0x2e2   :  { %929 = vmatprep.subr.bf16.mxu1 %v928_v35  ;;  %v411_v38 = vsel %vm153_vm5, %v1038_v32, %v1039_v31 }
 0x2e3   :  { %v1047_v39 = vpop.permute.xlu0 %1046  ;;  %931 = vmatpush3.bf16.msra.mxu1 %v928_v35  ;;  %v410_v40 = vsel %vm153_vm5, %v1033_v37, %v1034_v36 }
 0x2e4   :  { %v1049_v41 = vunpack.i.h.bf16 %v1047_v39  ;;  %v1048_v42 = vunpack.i.l.bf16 %v1047_v39  ;;  %v1042_v43 = vpop.permute.xlu1 %1041  ;;  %v932_v44 = vpack.c.bf16 %v411_v38, %v410_v40 }
 0x2e5   :  { %v1044_v45 = vunpack.i.h.bf16 %v1042_v43  ;;  %v1043_v46 = vunpack.i.l.bf16 %v1042_v43  ;;  %v580_v43 = vld [vmem:[%s1398_s7 + $0x18] sm:$0xff] }
 0x2e6   :  { %933 = vmatprep.subr.bf16.mxu1 %v932_v44  ;;  %v413_v47 = vsel %vm153_vm5, %v1048_v42, %v1049_v41  ;;  %v578_v42 = vld [vmem:[%s1398_s7 + $0x8] sm:$0xff]  ;;  %s1099_s7 = smov [#allocation3]  }
 0x2e7   :  { %935 = vmatpush3.bf16.msra.mxu1 %v932_v44  ;;  %v412_v48 = vsel %vm153_vm5, %v1043_v46, %v1044_v45  ;;  %s756_s13 = sshll.u32 %s1099_s7, 4  ;;  %s757_s13 = int_to_ptr.vmem [resolvable:$true] %s756_s13 }
 0x2e8   :  { %v936_v49 = vpack.c.bf16 %v413_v47, %v412_v48  ;;  %s1070_s14 = scalar_lea.vmem %s757_s13, 512  ;;  %p1075_p1 = scmp.lt.s32.totalorder %s757_s13, %s757_s13 }
 0x2e9   :  { %p1071_p0 = scmp.ne.s32.totalorder %s757_s13, %s1070_s14  ;;  %p1076_p2 = scmp.lt.s32.totalorder %s1070_s14, %s1070_s14 }
 0x2ea   :  { %937 = vmatprep.subr.bf16.mxu1 %v936_v49 }
 0x2eb   :  { %939 = vmatpush3.bf16.msra.mxu1 %v936_v49  ;;  %p1077_p3 = por %p1076_p2, %p1075_p1 }
 0x2ed   :  { %p1078_p4 = pnand %p1077_p3, %p1071_p0 }
 0x2ee   :  { %872 = vmatmul.mubr.msk.f32.vlgmr.msra.gmra.mrb[0].mxu1 %vm166_vm3, %v419_v50 }
 0x2ef   :  { %889 = vmatprep.mubr.msk.f32.mxu1 %vm581_vm12, %v579_v14 }
 0x2f4   :  { %v511_v51 = vpop.permute.xlu0 %510 }
 0x2f5   :  { %v506_v52 = vpop.permute.xlu1 %505 }
 0x2f8   :  { %v525_v56 = vpop.permute.xlu0 %524 }
 0x2f9   :  { %v520_v58 = vpop.permute.xlu1 %519 }
 0x3c1   :  { %v873_v53 = vpop.f32.mrb[0].mxu1 }
 0x3c2   :  { %v514_v54 = vmul.f32 %v873_v53, %v511_v51  ;;  %v492_v55 = vpop.f32.mrb[1].mxu1 }
 0x3c3   :  { %v513_v57 = vmul.f32 %v506_v52, %v492_v55 }
 0x3c4   :  { %v528_v59 = vadd.f32 %v525_v56, %v514_v54 }
 0x3c5   :  { %v527_v60 = vadd.f32 %v520_v58, %v513_v57 }
 0x3c6   :  { %v530_v61 = vmax.f32 %v528_v59, 0.0 }
 0x3c7   :  { %v529_v62 = vmax.f32 %v527_v60, 0.0 }
 0x3c8   :  { %v532_v63 = vsel %vm1257_vm11, %v530_v61, 0.0 }
 0x3c9   :  { %537 = vrot.lane.b32.xlu0 %v532_v63, %s1094_s17  ;;  %v531_v4 = vsel %vm1257_vm11, %v529_v62, 0.0 }
 0x3ca   :  { %535 = vrot.lane.b32.xlu1 %v531_v4, %s1094_s17 }
 0x43b   :  { %v538_v5 = vpop.permute.xlu0 %537 }
 0x43c   :  { %543 = vst.msk [vmem:[#allocation2 + $0x10] sm:$0xff] %vm87_vm2, %v538_v5  ;;  %v536_v6 = vpop.permute.xlu1 %535 }
 0x43d   :  { %544 = vst.msk [vmem:[#allocation2 + $0x18] sm:$0xff] %vm36_vm0, %v538_v5  ;;  %542 = vst.msk [vmem:[#allocation2 + $0x8] sm:$0xff] %vm36_vm0, %v536_v6 }
 0x43e   :  { %541 = vst.msk [vmem:[#allocation2] sm:$0xff] %vm87_vm2, %v536_v6 }
 0x443   :  { %v546_v7 = vld [vmem:[#allocation2 + $0x10] sm:$0xff] }
 0x444   :  { %v548_v8 = vld [vmem:[#allocation2 + $0x18] sm:$0xff]  ;;  %v547_v11 = vld [vmem:[#allocation2 + $0x8] sm:$0xff] }
 0x445   :  { %v1050_v9 = vpack.i.bf16 %v548_v8, %v546_v7  ;;  %v545_v10 = vld [vmem:[#allocation2] sm:$0xff] }
 0x446   :  { %v1055_v12 = vpack.i.bf16 %v547_v11, %v545_v10  ;;  %v940_v13 = vpack.c.bf16 %v546_v7, %v545_v10 }
 0x447   :  { %1051 = vrot.lane.b32.xlu0 %v1050_v9, %s1096_s0 }
 0x448   :  { %1056 = vrot.lane.b32.xlu1 %v1055_v12, %s1096_s0  ;;  %941 = vmatprep.subr.bf16.mxu0 %v940_v13 }
 0x449   :  { %952 = vmatprep.subr.bf16.mxu1 %v940_v13  ;;  %943 = vmatpush3.bf16.msra.mxu0 %v940_v13 }
 0x44a   :  { %955 = vmatpush3.bf16.msra.mxu1 %v940_v13 }
 0x44b   :  { %1066 = vrot.lane.b32.xlu0 %v1050_v9, %s1097_s22 }
 0x44c   :  { %1061 = vrot.lane.b32.xlu1 %v1055_v12, %s1097_s22 }
 0x44f   :  { %690 = vperm.xlu0 %1008, %v680_v15  }
 0x450   :  { %685 = vperm.xlu1 %1009, %v679_v16  }
 0x453   :  { %700 = vperm.xlu0 %1008, %v682_v17  }
 0x454   :  { %695 = vperm.xlu1 %1009, %v681_v18  }
 0x457   :  { %718 = vperm.xlu0 %1008, %v708_v19  }
 0x458   :  { %713 = vperm.xlu1 %1009, %v707_v20  }
 0x45b   :  { %728 = vperm.xlu0 %1008, %v710_v21  }
 0x45c   :  { %723 = vperm.xlu1 %1009, %v709_v22  }
 0x4b9   :  { %v1052_v23 = vpop.permute.xlu0 %1051 }
 0x4ba   :  { %v1054_v24 = vunpack.i.h.bf16 %v1052_v23  ;;  %v1053_v25 = vunpack.i.l.bf16 %v1052_v23  ;;  %v1057_v26 = vpop.permute.xlu1 %1056 }
 0x4bb   :  { %v1059_v27 = vunpack.i.h.bf16 %v1057_v26  ;;  %v1058_v28 = vunpack.i.l.bf16 %v1057_v26 }
 0x4bc   :  { %v562_v29 = vsel %vm128_vm4, %v1053_v25, %v1054_v24 }
 0x4bd   :  { %v561_v30 = vsel %vm128_vm4, %v1058_v28, %v1059_v27  ;;  %v1067_v31 = vpop.permute.xlu0 %1066 }
 0x4be   :  { %v944_v32 = vpack.c.bf16 %v562_v29, %v561_v30  ;;  %v1069_v33 = vunpack.i.h.bf16 %v1067_v31  ;;  %v1068_v35 = vunpack.i.l.bf16 %v1067_v31  ;;  %v1062_v36 = vpop.permute.xlu1 %1061 }
 0x4bf   :  { %v1064_v37 = vunpack.i.h.bf16 %v1062_v36  ;;  %v1063_v38 = vunpack.i.l.bf16 %v1062_v36 }
 0x4c0   :  { %v574_v39 = vsel %vm153_vm5, %v1068_v35, %v1069_v33  ;;  %945 = vmatprep.subr.bf16.mxu0 %v944_v32  ;;  %953 = vmatprep.subr.bf16.mxu1 %v944_v32 }
 0x4c1   :  { %v573_v40 = vsel %vm153_vm5, %v1063_v38, %v1064_v37  ;;  %947 = vmatpush3.bf16.msra.mxu0 %v944_v32  ;;  %956 = vmatpush3.bf16.msra.mxu1 %v944_v32 }
 0x4c2   :  { %v948_v41 = vpack.c.bf16 %v574_v39, %v573_v40 }
 0x4c4   :  { %949 = vmatprep.subr.bf16.mxu0 %v948_v41  ;;  %954 = vmatprep.subr.bf16.mxu1 %v948_v41 }
 0x4c5   :  { %951 = vmatpush3.bf16.msra.mxu0 %v948_v41  ;;  %957 = vmatpush3.bf16.msra.mxu1 %v948_v41 }
 0x4c8   :  { %887 = vmatmul.mubr.msk.f32.vlgmr.msra.gmra.mrb[4].mxu0 %vm581_vm12, %v578_v42  ;;  %890 = vmatmul.mubr.msk.f32.vlgmr.msra.gmra.mrb[2].mxu1 %vm581_vm12, %v580_v43 }
 0x4ce   :  { %v691_v44 = vpop.permute.xlu0 %690 }
 0x4cf   :  { %v686_v45 = vpop.permute.xlu1 %685 }
 0x4d2   :  { %v701_v46 = vpop.permute.xlu0 %700 }
 0x4d3   :  { %v696_v47 = vpop.permute.xlu1 %695 }
 0x4d6   :  { %v719_v48 = vpop.permute.xlu0 %718 }
 0x4d7   :  { %v714_v49 = vpop.permute.xlu1 %713 }
 0x4da   :  { %v729_v56 = vpop.permute.xlu0 %728 }
 0x4db   :  { %v724_v59 = vpop.permute.xlu1 %723 }
 0x59b   :  { %v888_v50 = vpop.f32.mrb[4].mxu0  ;;  %v891_v51 = vpop.f32.mrb[2].mxu1 }
 0x59c   :  { %v704_v52 = vmul.f32 %v888_v50, %v691_v44  ;;  %v706_v53 = vmul.f32 %v891_v51, %v701_v46  ;;  %v660_v54 = vpop.f32.mrb[5].mxu0  ;;  %v670_v55 = vpop.f32.mrb[3].mxu1 }
 0x59d   :  { %v703_v57 = vmul.f32 %v686_v45, %v660_v54  ;;  %v705_v58 = vmul.f32 %v696_v47, %v670_v55 }
 0x59e   :  { %v732_v60 = vadd.f32 %v719_v48, %v704_v52  ;;  %v734_v61 = vadd.f32 %v729_v56, %v706_v53 }
 0x59f   :  { %v731_v62 = vadd.f32 %v714_v49, %v703_v57  ;;  %v733_v63 = vadd.f32 %v724_v59, %v705_v58 }
 0x5a0   :  { %v736_v4 = vmax.f32 %v732_v60, 0.0  ;;  %v738_v5 = vmax.f32 %v734_v61, 0.0 }
 0x5a1   :  { %v735_v6 = vmax.f32 %v731_v62, 0.0  ;;  %v737_v7 = vmax.f32 %v733_v63, 0.0 }
 0x5a2   :  { %v744_v8 = vadd.f32 %v736_v4, %v1179_v3  ;;  %v746_v9 = vadd.f32 %v738_v5, %v1174_v2 }
 0x5a3   :  { %v743_v10 = vadd.f32 %v735_v6, %v1165_v1  ;;  %v745_v11 = vadd.f32 %v737_v7, %v1160_v0 }
 0x5a4   :  { %748 = vst [vmem:[#allocation3 + $0x8] sm:$0xff] %v744_v8  ;;  %750 = vst [vmem:[#allocation3 + $0x18] sm:$0xff] %v746_v9 }
 0x5a5   :  { %747 = vst [vmem:[#allocation3] sm:$0xff] %v743_v10  ;;  %749 = vst [vmem:[#allocation3 + $0x10] sm:$0xff] %v745_v11 }
 0x5a6   :  { %1081 = shalt.err (!%p1078_p4)
}
 0x5a7   :  { %s1082_s6 = scalar_lea.hbm %s1401_s10, 512 }
 0x5a8   :  { %p1083_p5 = scmp.ne.s32.totalorder %s1401_s10, %s1082_s6  ;;  %p1086_p6 = scmp.lt.u32.totalorder %s1082_s6, %s1401_s10 }
 0x5aa   :  { %p1088_p7 = pnand %p1086_p6, %p1083_p5 }
 0x5ac   :  { %1091 = shalt.err (!%p1088_p7)
}
 0x5ad   :  { %s1100_s19 = smov 128   ;;  %s1101_s20 = smov 8  }
 0x5ae   :  { %762 = dma.vmem_to_hbm [thread:$0]  %s757_s13, 512, %s1401_s10, [#allocation4], %s1100_s19, %s1100_s19, %s1101_s20  }
 0x5af   :  { %1092 = dma.done.wait [#allocation4], 512  }
 0x5b0   :  { %1093 = vsyncadd [#allocation4], 4294966784 }
 0x5b1   :  { %766 = vsyncpa [#allocation4], 1 }

</bundles_post_ra>
